<compile_context>
chip_gen: v6e
topology: v6e:2x2x1
jax: 0.10.0
libtpu: 0.0.40
codegen_flags: <defaults>
</compile_context>

<pallas_src>
import jax
import jax.numpy as jnp
import numpy as np
from jax.experimental import pallas as pl
from jax.experimental.pallas import tpu as pltpu

KSIZE = 5   # conv kernel size for both conv layers
C1 = 16     # conv1 out channels
C2 = 32     # conv2 out channels

_PARAM_ORDER = ("w1b", "b1f", "w2b", "b2f", "fw1", "fb1", "fw2", "fb2",
                "fw3", "fb3")


# ---------------------------------------------------------------------------
# Kernel: 5 matmuls, f32 accumulation, ReLU between layers.
# ---------------------------------------------------------------------------
def muscle_julius_kernel(x_ref, w1b_ref, b1f_ref, w2b_ref, b2f_ref,
                         fw1_ref, fb1_ref, fw2_ref, fb2_ref,
                         fw3_ref, fb3_ref, o_ref):
    cdt = w1b_ref.dtype  # compute dtype fed to the MXU (bf16 default, or f32)

    x = x_ref[...]       # already in compute dtype (cast once in the wrapper)

    # conv1 (banded matmul) + bias + ReLU            -> (TB, L1*C1)
    h1 = jnp.maximum(
        jnp.dot(x, w1b_ref[...], preferred_element_type=jnp.float32)
        + b1f_ref[...], 0.0)

    # conv2 (banded matmul) + bias + ReLU            -> (TB, L2*C2)
    h2 = jnp.maximum(
        jnp.dot(h1.astype(cdt), w2b_ref[...],
                preferred_element_type=jnp.float32)
        + b2f_ref[...], 0.0)

    # TODO(synk): nn.Dropout(0.5) is identity at inference time; not applied.

    # fc1 (flatten folded into a one-time weight row permutation) + ReLU
    h3 = jnp.maximum(
        jnp.dot(h2.astype(cdt), fw1_ref[...],
                preferred_element_type=jnp.float32)
        + fb1_ref[...], 0.0)

    # fc2 + ReLU
    h4 = jnp.maximum(
        jnp.dot(h3.astype(cdt), fw2_ref[...],
                preferred_element_type=jnp.float32)
        + fb2_ref[...], 0.0)

    # fc3 (output columns padded to a multiple of 128 for lane-dense stores)
    o_ref[...] = (
        jnp.dot(h4.astype(cdt), fw3_ref[...],
                preferred_element_type=jnp.float32)
        + fb3_ref[...]).astype(o_ref.dtype)


# ---------------------------------------------------------------------------
# Wrapper: batch-tiled grid, weights resident across grid steps.
# ---------------------------------------------------------------------------
def muscle_julius_forward(x, kparams, out_dim, *, tile_b=None):
    B, L = x.shape
    cdt = kparams["w1b"].dtype
    out_pad = kparams["fw3"].shape[1]
    # Store the padded output narrow (bf16) when computing in bf16; the
    # wrapper slices + casts back to f32 for callers.
    out_dtype = jnp.bfloat16 if cdt == jnp.bfloat16 else jnp.float32

    n1 = kparams["w1b"].shape[1]   # L1*C1
    n2 = kparams["w2b"].shape[1]   # L2*C2
    n3 = kparams["fw1"].shape[1]   # 128
    n4 = kparams["fw2"].shape[1]   # 64

    c_item = jnp.dtype(cdt).itemsize
    o_item = jnp.dtype(out_dtype).itemsize

    # Per-row VMEM footprint estimate: double-buffered x block, f32 + cdt
    # copies of h1..h4, f32 pre-cast result, double-buffered output block.
    per_row_bytes = (2 * L * c_item
                     + (n1 + n2 + n3 + n4) * (4 + c_item)
                     + out_pad * 4
                     + 2 * out_pad * o_item)

    ACT_BUDGET = 30 * 1024 * 1024   # activation VMEM budget for one tile

    if tile_b is None:
        candidates = [4096, 2048, 1024, 512, 256, 128, 64, 32, 16]
        fitting = [c for c in candidates
                   if B % c == 0 and c * per_row_bytes <= ACT_BUDGET]
        # Prefer a tile that yields >= 2 grid steps so v7x can shard the
        # "parallel" batch axis across its 2 TensorCores.
        multi = [c for c in fitting if B // c >= 2]
        if multi:
            tile_b = multi[0]
        elif fitting:
            tile_b = fitting[0]
        else:
            tile_b = B   # tiny / awkward batches: single full-batch step
    assert B % tile_b == 0

    weight_bytes = sum(
        int(np.prod(kparams[k].shape)) * jnp.dtype(kparams[k].dtype).itemsize
        for k in _PARAM_ORDER)

    # Raise the scoped VMEM limit explicitly so fat tiles compile on every
    # generation (v5e default scoped limit is only 16 MiB); keep <= 48 MiB so
    # v7x's 64 MiB physical VMEM still has headroom.
    vmem_needed = 2 * weight_bytes + tile_b * per_row_bytes
    vmem_limit = int(min(max(32 << 20, int(vmem_needed * 1.5)), 48 << 20))

    flops_per_row = 2 * (L * n1 + n1 * n2 + n2 * n3 + n3 * n4 + n4 * out_pad)
    cost = pl.CostEstimate(
        flops=int(flops_per_row) * int(B),
        transcendentals=0,
        bytes_accessed=int(B) * (L * c_item + out_pad * o_item) + weight_bytes)

    # Cast x to the compute dtype once, outside the kernel (halves x DMA).
    x_c = x.astype(cdt)

    in_specs = [pl.BlockSpec((tile_b, L), lambda i: (i, 0))]
    for k in _PARAM_ORDER:
        # Full-array blocks, same (0,0) block every step -> VMEM-resident.
        in_specs.append(pl.BlockSpec(kparams[k].shape, lambda i: (0, 0)))

    out = pl.pallas_call(
        muscle_julius_kernel,
        out_shape=jax.ShapeDtypeStruct((B, out_pad), out_dtype),
        grid=(B // tile_b,),
        in_specs=in_specs,
        out_specs=pl.BlockSpec((tile_b, out_pad), lambda i: (i, 0)),
        compiler_params=pltpu.CompilerParams(
            dimension_semantics=("parallel",),
            vmem_limit_bytes=vmem_limit),
        cost_estimate=cost,
    )(x_c, *[kparams[k] for k in _PARAM_ORDER])

    return out[:, :out_dim].astype(jnp.float32)


# ---------------------------------------------------------------------------
# One-time parameter preparation from torch-layout weights.
# ---------------------------------------------------------------------------
def prepare_params(tp, L, out_dim, compute_dtype=jnp.bfloat16):
    L1 = L - (KSIZE - 1)
    L2 = L1 - (KSIZE - 1)

    w1 = np.asarray(tp["conv1_w"], np.float32)    # (C1, 1, K)
    b1 = np.asarray(tp["conv1_b"], np.float32)    # (C1,)
    w2 = np.asarray(tp["conv2_w"], np.float32)    # (C2, C1, K)
    b2 = np.asarray(tp["conv2_b"], np.float32)    # (C2,)
    fc1_w = np.asarray(tp["fc1_w"], np.float32)   # (128, C2*L2)
    fc1_b = np.asarray(tp["fc1_b"], np.float32)   # (128,)
    fc2_w = np.asarray(tp["fc2_w"], np.float32)   # (64, 128)
    fc2_b = np.asarray(tp["fc2_b"], np.float32)   # (64,)
    fc3_w = np.asarray(tp["fc3_w"], np.float32)   # (OUT, 64)
    fc3_b = np.asarray(tp["fc3_b"], np.float32)   # (OUT,)

    # conv1 as banded matmul:  h1_flat[b, l1*C1 + c1] = sum_t x[b, l1+t]*w1[c1,0,t]
    w1_band = np.zeros((L, L1 * C1), np.float32)
    for l1 in range(L1):
        for t in range(KSIZE):
            w1_band[l1 + t, l1 * C1:(l1 + 1) * C1] = w1[:, 0, t]
    b1_flat = np.tile(b1, L1).reshape(1, L1 * C1)

    # conv2 as banded matmul:
    #   h2_flat[b, l2*C2 + c2] = sum_{t,c1} h1_flat[b, (l2+t)*C1 + c1] * w2[c2,c1,t]
    w2_band = np.zeros((L1 * C1, L2 * C2), np.float32)
    for l2 in range(L2):
        for t in range(KSIZE):
            w2_band[(l2 + t) * C1:(l2 + t + 1) * C1,
                    l2 * C2:(l2 + 1) * C2] = w2[:, :, t].T
    b2_flat = np.tile(b2, L2).reshape(1, L2 * C2)

    # fc1: absorb the channel-major torch flatten (index c2*L2 + l2) into a
    # row permutation so the kernel's natural (l2*C2 + c2) order is correct.
    j = np.arange(L2 * C2)
    torch_idx = (j % C2) * L2 + (j // C2)
    fw1 = fc1_w.T[torch_idx]                       # (L2*C2, 128)
    fb1 = fc1_b.reshape(1, -1)

    fw2 = fc2_w.T                                  # (128, 64)
    fb2 = fc2_b.reshape(1, -1)

    # fc3: pad output columns to a multiple of 128 for lane-dense stores.
    out_pad = ((out_dim + 127) // 128) * 128
    fw3 = np.zeros((fc3_w.shape[1], out_pad), np.float32)
    fw3[:, :out_dim] = fc3_w.T
    fb3 = np.zeros((1, out_pad), np.float32)
    fb3[0, :out_dim] = fc3_b

    def as_w(a):   # matmul operands -> compute dtype (bf16 default, or f32)
        return jnp.asarray(a, dtype=compute_dtype)

    def as_b(a):   # biases stay f32 (added to f32 accumulators)
        return jnp.asarray(a, dtype=jnp.float32)

    return {
        "w1b": as_w(w1_band), "b1f": as_b(b1_flat),
        "w2b": as_w(w2_band), "b2f": as_b(b2_flat),
        "fw1": as_w(fw1), "fb1": as_b(fb1),
        "fw2": as_w(fw2), "fb2": as_b(fb2),
        "fw3": as_w(fw3), "fb3": as_b(fb3),
    }


# ---------------------------------------------------------------------------
# Pure-JAX reference replicating the *torch* math directly from torch-layout
# params (independent of the band/permutation tricks used by the kernel).
# ---------------------------------------------------------------------------
def reference_forward(x, tp):
    B, L = x.shape
    w1, b1 = tp["conv1_w"], tp["conv1_b"]
    w2, b2 = tp["conv2_w"], tp["conv2_b"]
    L1 = L - (KSIZE - 1)
    L2 = L1 - (KSIZE - 1)

    h1 = jnp.zeros((B, C1, L1), jnp.float32)
    for t in range(KSIZE):
        h1 = h1 + x[:, None, t:t + L1] * w1[None, :, 0, t:t + 1]
    h1 = jnp.maximum(h1 + b1[None, :, None], 0.0)

    h2 = jnp.zeros((B, C2, L2), jnp.float32)
    for t in range(KSIZE):
        h2 = h2 + jnp.einsum('bcl,oc->bol', h1[:, :, t:t + L2], w2[:, :, t])
    h2 = jnp.maximum(h2 + b2[None, :, None], 0.0)

    flat = h2.reshape(B, -1)                     # channel-major, like .view(B,-1)
    h3 = jnp.maximum(flat @ tp["fc1_w"].T + tp["fc1_b"], 0.0)
    h4 = jnp.maximum(h3 @ tp["fc2_w"].T + tp["fc2_b"], 0.0)
    return h4 @ tp["fc3_w"].T + tp["fc3_b"]


def init_torch_params(key, L, out_dim):
    """Deterministic synthetic parameters in PyTorch layouts."""
    L2 = L - 8
    ks = jax.random.split(key, 10)
    return {
        "conv1_w": jax.random.normal(ks[0], (C1, 1, KSIZE), jnp.float32) * 0.1,
        "conv1_b": jax.random.normal(ks[1], (C1,), jnp.float32) * 0.1,
        "conv2_w": jax.random.normal(ks[2], (C2, C1, KSIZE), jnp.float32) * 0.1,
        "conv2_b": jax.random.normal(ks[3], (C2,), jnp.float32) * 0.1,
        "fc1_w": jax.random.normal(ks[4], (128, C2 * L2), jnp.float32) * 0.05,
        "fc1_b": jax.random.normal(ks[5], (128,), jnp.float32) * 0.05,
        "fc2_w": jax.random.normal(ks[6], (64, 128), jnp.float32) * 0.05,
        "fc2_b": jax.random.normal(ks[7], (64,), jnp.float32) * 0.05,
        "fc3_w": jax.random.normal(ks[8], (out_dim, 64), jnp.float32) * 0.05,
        "fc3_b": jax.random.normal(ks[9], (out_dim,), jnp.float32) * 0.05,
    }


if __name__ == "__main__":
    B, L, OUT = 2, 16, 4      # input_shape=(B, 16) -> output_shape=(B, 4)
    key = jax.random.PRNGKey(0)
    k_x, k_p = jax.random.split(key)
    x = jax.random.normal(k_x, (B, L), jnp.float32)
    tparams = init_torch_params(k_p, L, OUT)

    ref = jax.block_until_ready(reference_forward(x, tparams))

    # bf16 compute (default on all generations) — looser check, bf16 rounds
    # compound over the 5 layers.
    kp_bf16 = prepare_params(tparams, L, OUT)   # compute_dtype defaults to bf16
    out_bf16 = jax.block_until_ready(muscle_julius_forward(x, kp_bf16, OUT))
    assert out_bf16.shape == (B, OUT)
    assert out_bf16.dtype == jnp.float32
    np.testing.assert_allclose(np.asarray(out_bf16), np.asarray(ref),
                               rtol=3e-2, atol=3e-2)

    # f32 path for accuracy-sensitive users — strict check against the
    # torch-math reference.
    kp_f32 = prepare_params(tparams, L, OUT, compute_dtype=jnp.float32)
    out_f32 = jax.block_until_ready(muscle_julius_forward(x, kp_f32, OUT))
    np.testing.assert_allclose(np.asarray(out_f32), np.asarray(ref),
                               rtol=1e-3, atol=1e-3)

    print("KERNEL_OK")
</pallas_src>

<mosaic_0001>
module attributes {stable_mosaic.version = 11 : i64} {
  func.func @muscle_julius_kernel(%arg0: i32, %arg1: memref<2x16xbf16, #tpu.memory_space<vmem>>, %arg2: memref<16x192xbf16, #tpu.memory_space<vmem>>, %arg3: memref<1x192xf32, #tpu.memory_space<vmem>>, %arg4: memref<192x256xbf16, #tpu.memory_space<vmem>>, %arg5: memref<1x256xf32, #tpu.memory_space<vmem>>, %arg6: memref<256x128xbf16, #tpu.memory_space<vmem>>, %arg7: memref<1x128xf32, #tpu.memory_space<vmem>>, %arg8: memref<128x64xbf16, #tpu.memory_space<vmem>>, %arg9: memref<1x64xf32, #tpu.memory_space<vmem>>, %arg10: memref<64x128xbf16, #tpu.memory_space<vmem>>, %arg11: memref<1x128xf32, #tpu.memory_space<vmem>>, %arg12: memref<2x128xbf16, #tpu.memory_space<vmem>>) attributes {dimension_semantics = [#tpu.dimension_semantics<parallel>], iteration_bounds = array<i64: 1>, scalar_prefetch = 0 : i64, scratch_operands = 0 : i64, tpu.core_type = #tpu.core_type<tc>, window_params = [{transform_indices = @transform_0, window_bounds = array<i64: 2, 16>}, {pipeline_mode = #tpu.pipeline_mode<synchronous>, transform_indices = @transform_1, window_bounds = array<i64: 16, 192>}, {pipeline_mode = #tpu.pipeline_mode<synchronous>, transform_indices = @transform_2, window_bounds = array<i64: 1, 192>}, {pipeline_mode = #tpu.pipeline_mode<synchronous>, transform_indices = @transform_3, window_bounds = array<i64: 192, 256>}, {pipeline_mode = #tpu.pipeline_mode<synchronous>, transform_indices = @transform_4, window_bounds = array<i64: 1, 256>}, {pipeline_mode = #tpu.pipeline_mode<synchronous>, transform_indices = @transform_5, window_bounds = array<i64: 256, 128>}, {pipeline_mode = #tpu.pipeline_mode<synchronous>, transform_indices = @transform_6, window_bounds = array<i64: 1, 128>}, {pipeline_mode = #tpu.pipeline_mode<synchronous>, transform_indices = @transform_7, window_bounds = array<i64: 128, 64>}, {pipeline_mode = #tpu.pipeline_mode<synchronous>, transform_indices = @transform_8, window_bounds = array<i64: 1, 64>}, {pipeline_mode = #tpu.pipeline_mode<synchronous>, transform_indices = @transform_9, window_bounds = array<i64: 64, 128>}, {pipeline_mode = #tpu.pipeline_mode<synchronous>, transform_indices = @transform_10, window_bounds = array<i64: 1, 128>}, {transform_indices = @transform_11, window_bounds = array<i64: 2, 128>}]} {
    %c0 = arith.constant 0 : index
    %c0_0 = arith.constant 0 : index
    %0 = vector.load %arg1[%c0, %c0_0] : memref<2x16xbf16, #tpu.memory_space<vmem>>, vector<2x16xbf16>
    %c0_1 = arith.constant 0 : index
    %c0_2 = arith.constant 0 : index
    %1 = vector.load %arg2[%c0_1, %c0_2] : memref<16x192xbf16, #tpu.memory_space<vmem>>, vector<16x192xbf16>
    %cst = arith.constant dense<0.000000e+00> : vector<2x192xf32>
    %2 = tpu.matmul %0, %1, %cst {dimension_numbers = #tpu.dot_dimension_numbers<[1], [0], [0], [1], [0, 0, 1, 1], [], []>} : vector<2x16xbf16>, vector<16x192xbf16>, vector<2x192xf32> -> vector<2x192xf32>
    %c0_3 = arith.constant 0 : index
    %c0_4 = arith.constant 0 : index
    %3 = vector.load %arg3[%c0_3, %c0_4] : memref<1x192xf32, #tpu.memory_space<vmem>>, vector<1x192xf32>
    %4 = vector.broadcast %3 : vector<1x192xf32> to vector<2x192xf32>
    %5 = arith.addf %2, %4 : vector<2x192xf32>
    %cst_5 = arith.constant 0.000000e+00 : f32
    %6 = vector.broadcast %cst_5 : f32 to vector<2x192xf32>
    %7 = arith.maximumf %5, %6 : vector<2x192xf32>
    %8 = arith.truncf %7 : vector<2x192xf32> to vector<2x192xbf16>
    %c0_6 = arith.constant 0 : index
    %c0_7 = arith.constant 0 : index
    %9 = vector.load %arg4[%c0_6, %c0_7] : memref<192x256xbf16, #tpu.memory_space<vmem>>, vector<192x256xbf16>
    %cst_8 = arith.constant dense<0.000000e+00> : vector<2x256xf32>
    %10 = tpu.matmul %8, %9, %cst_8 {dimension_numbers = #tpu.dot_dimension_numbers<[1], [0], [0], [1], [0, 0, 1, 1], [], []>} : vector<2x192xbf16>, vector<192x256xbf16>, vector<2x256xf32> -> vector<2x256xf32>
    %c0_9 = arith.constant 0 : index
    %c0_10 = arith.constant 0 : index
    %11 = vector.load %arg5[%c0_9, %c0_10] : memref<1x256xf32, #tpu.memory_space<vmem>>, vector<1x256xf32>
    %12 = vector.broadcast %11 : vector<1x256xf32> to vector<2x256xf32>
    %13 = arith.addf %10, %12 : vector<2x256xf32>
    %cst_11 = arith.constant 0.000000e+00 : f32
    %14 = vector.broadcast %cst_11 : f32 to vector<2x256xf32>
    %15 = arith.maximumf %13, %14 : vector<2x256xf32>
    %16 = arith.truncf %15 : vector<2x256xf32> to vector<2x256xbf16>
    %c0_12 = arith.constant 0 : index
    %c0_13 = arith.constant 0 : index
    %17 = vector.load %arg6[%c0_12, %c0_13] : memref<256x128xbf16, #tpu.memory_space<vmem>>, vector<256x128xbf16>
    %cst_14 = arith.constant dense<0.000000e+00> : vector<2x128xf32>
    %18 = tpu.matmul %16, %17, %cst_14 {dimension_numbers = #tpu.dot_dimension_numbers<[1], [0], [0], [1], [0, 0, 1, 1], [], []>} : vector<2x256xbf16>, vector<256x128xbf16>, vector<2x128xf32> -> vector<2x128xf32>
    %c0_15 = arith.constant 0 : index
    %c0_16 = arith.constant 0 : index
    %19 = vector.load %arg7[%c0_15, %c0_16] : memref<1x128xf32, #tpu.memory_space<vmem>>, vector<1x128xf32>
    %20 = vector.broadcast %19 : vector<1x128xf32> to vector<2x128xf32>
    %21 = arith.addf %18, %20 : vector<2x128xf32>
    %cst_17 = arith.constant 0.000000e+00 : f32
    %22 = vector.broadcast %cst_17 : f32 to vector<2x128xf32>
    %23 = arith.maximumf %21, %22 : vector<2x128xf32>
    %24 = arith.truncf %23 : vector<2x128xf32> to vector<2x128xbf16>
    %c0_18 = arith.constant 0 : index
    %c0_19 = arith.constant 0 : index
    %25 = vector.load %arg8[%c0_18, %c0_19] : memref<128x64xbf16, #tpu.memory_space<vmem>>, vector<128x64xbf16>
    %cst_20 = arith.constant dense<0.000000e+00> : vector<2x64xf32>
    %26 = tpu.matmul %24, %25, %cst_20 {dimension_numbers = #tpu.dot_dimension_numbers<[1], [0], [0], [1], [0, 0, 1, 1], [], []>} : vector<2x128xbf16>, vector<128x64xbf16>, vector<2x64xf32> -> vector<2x64xf32>
    %c0_21 = arith.constant 0 : index
    %c0_22 = arith.constant 0 : index
    %27 = vector.load %arg9[%c0_21, %c0_22] : memref<1x64xf32, #tpu.memory_space<vmem>>, vector<1x64xf32>
    %28 = vector.broadcast %27 : vector<1x64xf32> to vector<2x64xf32>
    %29 = arith.addf %26, %28 : vector<2x64xf32>
    %cst_23 = arith.constant 0.000000e+00 : f32
    %30 = vector.broadcast %cst_23 : f32 to vector<2x64xf32>
    %31 = arith.maximumf %29, %30 : vector<2x64xf32>
    %32 = arith.truncf %31 : vector<2x64xf32> to vector<2x64xbf16>
    %c0_24 = arith.constant 0 : index
    %c0_25 = arith.constant 0 : index
    %33 = vector.load %arg10[%c0_24, %c0_25] : memref<64x128xbf16, #tpu.memory_space<vmem>>, vector<64x128xbf16>
    %cst_26 = arith.constant dense<0.000000e+00> : vector<2x128xf32>
    %34 = tpu.matmul %32, %33, %cst_26 {dimension_numbers = #tpu.dot_dimension_numbers<[1], [0], [0], [1], [0, 0, 1, 1], [], []>} : vector<2x64xbf16>, vector<64x128xbf16>, vector<2x128xf32> -> vector<2x128xf32>
    %c0_27 = arith.constant 0 : index
    %c0_28 = arith.constant 0 : index
    %35 = vector.load %arg11[%c0_27, %c0_28] : memref<1x128xf32, #tpu.memory_space<vmem>>, vector<1x128xf32>
    %36 = vector.broadcast %35 : vector<1x128xf32> to vector<2x128xf32>
    %37 = arith.addf %34, %36 : vector<2x128xf32>
    %38 = arith.truncf %37 : vector<2x128xf32> to vector<2x128xbf16>
    %c0_29 = arith.constant 0 : index
    %c0_30 = arith.constant 0 : index
    %39 = vector.load %arg12[%c0_29, %c0_30] : memref<2x128xbf16, #tpu.memory_space<vmem>>, vector<2x128xbf16>
    tpu.vector_store %arg12[%c0_29, %c0_30], %38 {strides = array<i32>} : memref<2x128xbf16, #tpu.memory_space<vmem>>, vector<2x128xbf16>,
    return
  }
  func.func @transform_0(%arg0: i32) -> (i32, i32) {
    %c0_i32 = arith.constant 0 : i32
    %c0_i32_0 = arith.constant 0 : i32
    return %arg0, %c0_i32 : i32, i32
  }
  func.func @transform_1(%arg0: i32) -> (i32, i32) {
    %c0_i32 = arith.constant 0 : i32
    %c0_i32_0 = arith.constant 0 : i32
    %c0_i32_1 = arith.constant 0 : i32
    return %c0_i32, %c0_i32_0 : i32, i32
  }
  func.func @transform_2(%arg0: i32) -> (i32, i32) {
    %c0_i32 = arith.constant 0 : i32
    %c0_i32_0 = arith.constant 0 : i32
    %c0_i32_1 = arith.constant 0 : i32
    return %c0_i32, %c0_i32_0 : i32, i32
  }
  func.func @transform_3(%arg0: i32) -> (i32, i32) {
    %c0_i32 = arith.constant 0 : i32
    %c0_i32_0 = arith.constant 0 : i32
    %c0_i32_1 = arith.constant 0 : i32
    return %c0_i32, %c0_i32_0 : i32, i32
  }
  func.func @transform_4(%arg0: i32) -> (i32, i32) {
    %c0_i32 = arith.constant 0 : i32
    %c0_i32_0 = arith.constant 0 : i32
    %c0_i32_1 = arith.constant 0 : i32
    return %c0_i32, %c0_i32_0 : i32, i32
  }
  func.func @transform_5(%arg0: i32) -> (i32, i32) {
    %c0_i32 = arith.constant 0 : i32
    %c0_i32_0 = arith.constant 0 : i32
    %c0_i32_1 = arith.constant 0 : i32
    return %c0_i32, %c0_i32_0 : i32, i32
  }
  func.func @transform_6(%arg0: i32) -> (i32, i32) {
    %c0_i32 = arith.constant 0 : i32
    %c0_i32_0 = arith.constant 0 : i32
    %c0_i32_1 = arith.constant 0 : i32
    return %c0_i32, %c0_i32_0 : i32, i32
  }
  func.func @transform_7(%arg0: i32) -> (i32, i32) {
    %c0_i32 = arith.constant 0 : i32
    %c0_i32_0 = arith.constant 0 : i32
    %c0_i32_1 = arith.constant 0 : i32
    return %c0_i32, %c0_i32_0 : i32, i32
  }
  func.func @transform_8(%arg0: i32) -> (i32, i32) {
    %c0_i32 = arith.constant 0 : i32
    %c0_i32_0 = arith.constant 0 : i32
    %c0_i32_1 = arith.constant 0 : i32
    return %c0_i32, %c0_i32_0 : i32, i32
  }
  func.func @transform_9(%arg0: i32) -> (i32, i32) {
    %c0_i32 = arith.constant 0 : i32
    %c0_i32_0 = arith.constant 0 : i32
    %c0_i32_1 = arith.constant 0 : i32
    return %c0_i32, %c0_i32_0 : i32, i32
  }
  func.func @transform_10(%arg0: i32) -> (i32, i32) {
    %c0_i32 = arith.constant 0 : i32
    %c0_i32_0 = arith.constant 0 : i32
    %c0_i32_1 = arith.constant 0 : i32
    return %c0_i32, %c0_i32_0 : i32, i32
  }
  func.func @transform_11(%arg0: i32) -> (i32, i32) {
    %c0_i32 = arith.constant 0 : i32
    %c0_i32_0 = arith.constant 0 : i32
    return %arg0, %c0_i32 : i32, i32
  }
}

</mosaic_0001>

<bundles_post_ra>
// kernel: tpu_custom_call.1
= control target key start
LH: loop header
LB: loop body
LE: loop exit
PB: predicated region body
PF: predicated region fallthrough
CT: control target
= control target key end

     0   :  { %16 = vsyncpa [#allocation3], 0  ;;  %s1149_s0 = inlined_call_operand.vmem [shape: bf16[2,16], index: 0, kind: input, shape index: {}]   ;;  %s1150_s1 = inlined_call_operand.vmem [shape: bf16[16,192], index: 1, kind: input, shape index: {}]   ;;  %s1151_s2 = inlined_call_operand.vmem [shape: f32[1,192], index: 2, kind: input, shape index: {}]   ;;  %s1152_s3 = inlined_call_operand.hbm [shape: bf16[192,256], index: 3, kind: input, shape index: {}]   ;;  %s1153_s4 = inlined_call_operand.vmem [shape: f32[1,256], index: 4, kind: input, shape index: {}]   ;;  %s1154_s5 = inlined_call_operand.hbm [shape: bf16[256,128], index: 5, kind: input, shape index: {}]   ;;  %s1155_s6 = inlined_call_operand.vmem [shape: f32[1,128], index: 6, kind: input, shape index: {}]   ;;  %s1156_s7 = inlined_call_operand.vmem [shape: bf16[128,64], index: 7, kind: input, shape index: {}]   ;;  %s1157_s8 = inlined_call_operand.vmem [shape: f32[1,64], index: 8, kind: input, shape index: {}]   ;;  %s1158_s9 = inlined_call_operand.vmem [shape: bf16[64,128], index: 9, kind: input, shape index: {}]   ;;  %s1159_s10 = inlined_call_operand.vmem [shape: f32[1,128], index: 10, kind: input, shape index: {}]   ;;  %s1160_s11 = inlined_call_operand.hbm [shape: bf16[2,128], index: 11, kind: output, shape index: {}]  }
   0x1   :  { %17 = vsyncpa [#allocation6], 0 }
   0x2   :  { %18 = vsyncpa [#allocation4], 0  ;;  %s1008_s17 = smov [#allocation2]  }
   0x3   :  { %s30_s18 = sshll.u32 %s1008_s17, 4  ;;  %s31_s18 = int_to_ptr.vmem [resolvable:$true] %s30_s18 }
   0x4   :  { %s950_s19 = scalar_lea.vmem %s31_s18, 3072  ;;  %p955_p1 = scmp.lt.s32.totalorder %s31_s18, %s31_s18 }
   0x5   :  { %p951_p0 = scmp.ne.s32.totalorder %s31_s18, %s950_s19  ;;  %p956_p2 = scmp.lt.s32.totalorder %s950_s19, %s950_s19 }
   0x7   :  { %p957_p3 = por %p956_p2, %p955_p1 }
   0x9   :  { %p958_p4 = pnand %p957_p3, %p951_p0 }
   0xb   :  { %961 = shalt.err (!%p958_p4)
}
   0xc   :  { %s1009_s20 = smov 128   ;;  %s1010_s21 = smov 8  }
   0xd   :  { %36 = dma.hbm_to_vmem [thread:$0]  %s1152_s3, 3072, %s31_s18, [#allocation3], %s1009_s20, %s1009_s20, %s1010_s21  }
   0xe   :  { %s1011_s24 = smov [#allocation5]  }
   0xf   :  { %s44_s25 = sshll.u32 %s1011_s24, 4  ;;  %s45_s25 = int_to_ptr.vmem [resolvable:$true] %s44_s25 }
  0x10   :  { %s970_s26 = scalar_lea.vmem %s45_s25, 2048  ;;  %p975_p6 = scmp.lt.s32.totalorder %s45_s25, %s45_s25 }
  0x11   :  { %p971_p5 = scmp.ne.s32.totalorder %s45_s25, %s970_s26  ;;  %p976_p7 = scmp.lt.s32.totalorder %s970_s26, %s970_s26 }
  0x13   :  { %p977_p8 = por %p976_p7, %p975_p6 }
  0x15   :  { %p978_p9 = pnand %p977_p8, %p971_p5 }
  0x17   :  { %981 = shalt.err (!%p978_p9)
}
  0x18   :  { %s1012_s27 = smov 64   ;;  %s1013_s28 = smov 4  }
  0x19   :  { %50 = dma.hbm_to_vmem [thread:$0]  %s1154_s5, 2048, %s45_s25, [#allocation6], %s1012_s27, %s1012_s27, %s1013_s28  }
  0x1a   :  { %1002 = dma.done.wait [#allocation3], 3072  }
  0x1b   :  { %1003 = vsyncadd [#allocation3], 4294964224 }
  0x1c   :  { %1004 = dma.done.wait [#allocation6], 2048  }
  0x1d   :  { %1005 = vsyncadd [#allocation6], 4294965248  ;;  %v1014_v0 = vmov 0   ;;  %v875_v1 = vld [vmem:[%s1150_s1 + $0x4] ss:$8 sps:$4 sm:$0xff]   ;;  %vm93_vm0 = vcmask 130048   ;;  %v73_v40 = vlaneseq }
  0x1e   :  { %129 = vmatprep.mubr.bf16.mxu0 %v1014_v0  ;;  %v877_v2 = vld [vmem:[%s1150_s1] ss:$8 sps:$4 sm:$0xff]   ;;  %111 = vmatprep.subr.bf16.mxu0 %v875_v1  ;;  %v878_v4 = vld [vmem:[#allocation2 + $0x74] ss:$8 sps:$4 sm:$0xff]   ;;  %v880_v5 = vld [vmem:[#allocation2 + $0x70] ss:$8 sps:$4 sm:$0xff]  }
  0x1f   :  { %v68_v3 = vld [vmem:[%s1149_s0] sm:$0x1]  ;;  %112 = vmatpush1.bf16.msra.mxu0 %v877_v2  ;;  %v881_v6 = vld [vmem:[#allocation2 + $0x64] ss:$8 sps:$4 sm:$0xff]   ;;  %302 = vmatprep.subr.bf16.mxu1 %v878_v4  ;;  %v884_v8 = vld [vmem:[#allocation2 + $0x54] ss:$8 sps:$4 sm:$0xff]  }
  0x20   :  { %303 = vmatpush1.bf16.msra.mxu1 %v880_v5  ;;  %v883_v7 = vld [vmem:[#allocation2 + $0x60] ss:$8 sps:$4 sm:$0xff]   ;;  %v886_v9 = vld [vmem:[#allocation2 + $0x50] ss:$8 sps:$4 sm:$0xff]   ;;  %v887_v10 = vld [vmem:[#allocation2 + $0x44] ss:$8 sps:$4 sm:$0xff]  }
  0x21   :  { %304 = vmatprep.subr.bf16.mxu1 %v881_v6  ;;  %v889_v11 = vld [vmem:[#allocation2 + $0x40] ss:$8 sps:$4 sm:$0xff]   ;;  %v890_v12 = vld [vmem:[#allocation2 + $0x34] ss:$8 sps:$4 sm:$0xff]   ;;  %v892_v13 = vld [vmem:[#allocation2 + $0x30] ss:$8 sps:$4 sm:$0xff]  }
  0x22   :  { %739 = vmatmul.mubr.msk.bf16.vlgmr.msra.gmra.mxu0 %vm93_vm0, %v68_v3  ;;  %v893_v14 = vld [vmem:[#allocation2 + $0x24] ss:$8 sps:$4 sm:$0xff]   ;;  %v895_v15 = vld [vmem:[#allocation2 + $0x20] ss:$8 sps:$4 sm:$0xff]   ;;  %v896_v16 = vld [vmem:[#allocation2 + $0x14] ss:$8 sps:$4 sm:$0xff]  }
  0x23   :  { %v898_v17 = vld [vmem:[#allocation2 + $0x10] ss:$8 sps:$4 sm:$0xff]   ;;  %v899_v18 = vld [vmem:[#allocation2 + $0x4] ss:$8 sps:$4 sm:$0xff]   ;;  %v901_v19 = vld [vmem:[#allocation2] ss:$8 sps:$4 sm:$0xff]  }
  0x24   :  { %305 = vmatpush1.bf16.msra.mxu1 %v883_v7  ;;  %v902_v20 = vld [vmem:[#allocation2 + $0xb4] ss:$8 sps:$4 sm:$0xff]   ;;  %v904_v21 = vld [vmem:[#allocation2 + $0xb0] ss:$8 sps:$4 sm:$0xff]   ;;  %v905_v22 = vld [vmem:[#allocation2 + $0xa4] ss:$8 sps:$4 sm:$0xff]  }
  0x25   :  { %306 = vmatprep.subr.bf16.mxu1 %v884_v8  ;;  %v907_v23 = vld [vmem:[#allocation2 + $0xa0] ss:$8 sps:$4 sm:$0xff]   ;;  %v908_v24 = vld [vmem:[#allocation2 + $0x94] ss:$8 sps:$4 sm:$0xff]   ;;  %v910_v25 = vld [vmem:[#allocation2 + $0x90] ss:$8 sps:$4 sm:$0xff]  }
  0x26   :  { %v911_v26 = vld [vmem:[#allocation2 + $0x84] ss:$8 sps:$4 sm:$0xff]   ;;  %v913_v27 = vld [vmem:[#allocation2 + $0x80] ss:$8 sps:$4 sm:$0xff]   ;;  %v914_v28 = vld [vmem:[#allocation5 + $0x78] sm:$0xff]   ;;  %v74_v41 = vshrl.u32 %v73_v40, 7 }
  0x27   :  { %v915_v29 = vld [vmem:[#allocation5 + $0x38] sm:$0xff]   ;;  %v916_v30 = vld [vmem:[#allocation5 + $0x70] sm:$0xff]   ;;  %797 = vmatprep.subr.bf16.mxu0 %v914_v28  ;;  %v918_v32 = vld [vmem:[#allocation5 + $0x68] sm:$0xff]   ;;  %vm298_vm1 = vcmask 523264   ;;  %v1015_v61 = vmov 0.0   ;;  %vm1016_vm2 = vmmov 0  }
  0x28   :  { %307 = vmatpush1.bf16.msra.mxu1 %v886_v9  ;;  %798 = vmatpush3.bf16.msra.mxu0 %v915_v29  ;;  %v917_v31 = vld [vmem:[#allocation5 + $0x30] sm:$0xff]   ;;  %v919_v33 = vld [vmem:[#allocation5 + $0x28] sm:$0xff]   ;;  %v920_v34 = vld [vmem:[#allocation5 + $0x60] sm:$0xff]   ;;  %v75_v42 = vsub.s32 0, %v74_v41  ;;  %v79_v44 = vsub.s32 1, %v74_v41 }
  0x29   :  { %308 = vmatprep.subr.bf16.mxu1 %v887_v10  ;;  %799 = vmatprep.subr.bf16.mxu0 %v916_v30  ;;  %v921_v35 = vld [vmem:[#allocation5 + $0x20] sm:$0xff]   ;;  %v922_v36 = vld [vmem:[#allocation5 + $0x58] sm:$0xff]   ;;  %v924_v38 = vld [vmem:[#allocation5 + $0x50] sm:$0xff]  }
  0x2a   :  { %v923_v37 = vld [vmem:[#allocation5 + $0x18] sm:$0xff]   ;;  %v925_v39 = vld [vmem:[#allocation5 + $0x10] sm:$0xff]   ;;  %v71_v43 = vld [vmem:[%s1151_s2] sm:$0x3] }
  0x2b   :  { %v76_v45 = vrot.slane %v71_v43, %v75_v42  ;;  %v80_v46 = vrot.slane %v71_v43, %v79_v44  ;;  %v926_v57 = vld [vmem:[#allocation5 + $0x48] sm:$0xff]   ;;  %v928_v59 = vld [vmem:[#allocation5 + $0x40] sm:$0xff]   ;;  %v930_v10 = vld [vmem:[%s1156_s7 + $0x38] sm:$0xff]  }
  0x2c   :  { %309 = vmatpush1.bf16.msra.mxu1 %v889_v11  ;;  %800 = vmatpush3.bf16.msra.mxu0 %v917_v31  ;;  %v927_v58 = vld [vmem:[#allocation5 + $0x8] sm:$0xff]   ;;  %v929_v60 = vld [vmem:[#allocation5] sm:$0xff]  }
  0x2d   :  { %310 = vmatprep.subr.bf16.mxu1 %v890_v12  ;;  %801 = vmatprep.subr.bf16.mxu0 %v918_v32  ;;  %v166_v62 = vld [vmem:[%s1153_s4] sm:$0x3]  ;;  %v931_v12 = vld [vmem:[%s1156_s7 + $0x30] sm:$0xff]   ;;  %v940_v30 = vld [vmem:[%s1158_s9 + $0x8] sm:$0xff]  }
  0x2e   :  { %v171_v63 = vrot.slane %v166_v62, %v75_v42  ;;  %v175_v0 = vrot.slane %v166_v62, %v79_v44  ;;  %v941_v31 = vld [vmem:[%s1158_s9] sm:$0xff]  }
  0x2f   :  { %v782_v32 = vld [vmem:[%s1157_s8] ss:$0 sm:$0xff] }
  0x30   :  { %311 = vmatpush1.bf16.msra.mxu1 %v892_v13  ;;  %802 = vmatpush3.bf16.msra.mxu0 %v919_v33  ;;  %v932_v13 = vld [vmem:[%s1156_s7 + $0x28] sm:$0xff]   ;;  %v791_v40 = vld [vmem:[%s1159_s10] ss:$0 sm:$0xff] }
  0x31   :  { %312 = vmatprep.subr.bf16.mxu1 %v893_v14  ;;  %803 = vmatprep.subr.bf16.mxu0 %v920_v34  ;;  %v933_v14 = vld [vmem:[%s1156_s7 + $0x20] sm:$0xff]  }
  0x34   :  { %313 = vmatpush1.bf16.msra.mxu1 %v895_v15  ;;  %804 = vmatpush3.bf16.msra.mxu0 %v921_v35  ;;  %v934_v15 = vld [vmem:[%s1156_s7 + $0x18] sm:$0xff]  }
  0x35   :  { %314 = vmatprep.subr.bf16.mxu1 %v896_v16  ;;  %805 = vmatprep.subr.bf16.mxu0 %v922_v36  ;;  %v935_v16 = vld [vmem:[%s1156_s7 + $0x10] sm:$0xff]  }
  0x38   :  { %315 = vmatpush1.bf16.msra.mxu1 %v898_v17  ;;  %806 = vmatpush3.bf16.msra.mxu0 %v923_v37  ;;  %v936_v17 = vld [vmem:[%s1156_s7 + $0x8] sm:$0xff]  }
  0x39   :  { %316 = vmatprep.subr.bf16.mxu1 %v899_v18  ;;  %807 = vmatprep.subr.bf16.mxu0 %v924_v38  ;;  %v937_v18 = vld [vmem:[%s1156_s7] sm:$0xff]  }
  0x3c   :  { %317 = vmatpush1.bf16.msra.mxu1 %v901_v19  ;;  %808 = vmatpush3.bf16.msra.mxu0 %v925_v39  ;;  %v938_v19 = vld [vmem:[%s1158_s9 + $0x18] sm:$0xff]  }
  0x3d   :  { %326 = vmatprep.subr.bf16.mxu1 %v902_v20  ;;  %809 = vmatprep.subr.bf16.mxu0 %v926_v57  ;;  %v939_v20 = vld [vmem:[%s1158_s9 + $0x10] sm:$0xff]   ;;  %s1017_s9 = smov [#allocation7]  }
  0x3e   :  { %s727_s19 = sshll.u32 %s1017_s9, 4  ;;  %s728_s19 = int_to_ptr.vmem [resolvable:$true] %s727_s19 }
  0x3f   :  { %s982_s8 = scalar_lea.vmem %s728_s19, 16  ;;  %s986_s20 = scalar_lea.vmem %s728_s19, 32 }
  0x40   :  { %327 = vmatpush2.bf16.msra.mxu1 %v904_v21  ;;  %810 = vmatpush3.bf16.msra.mxu0 %v927_v58  ;;  %p983_p10 = scmp.ne.s32.totalorder %s728_s19, %s982_s8  ;;  %p987_p11 = scmp.lt.s32.totalorder %s728_s19, %s728_s19 }
  0x41   :  { %328 = vmatprep.subr.bf16.mxu1 %v905_v22  ;;  %811 = vmatprep.subr.bf16.mxu0 %v928_v59  ;;  %v765_v22 = vld [vmem:[%s1155_s6] ss:$0 sm:$0xff]  ;;  %p988_p12 = scmp.lt.s32.totalorder %s986_s20, %s982_s8 }
  0x43   :  { %p989_p13 = por %p988_p12, %p987_p11 }
  0x44   :  { %329 = vmatpush2.bf16.msra.mxu1 %v907_v23  ;;  %812 = vmatpush3.bf16.msra.mxu0 %v929_v60 }
  0x45   :  { %330 = vmatprep.subr.bf16.mxu1 %v908_v24  ;;  %833 = vmatprep.subr.bf16.mxu0 %v1015_v61  ;;  %p990_p0 = pnand %p989_p13, %p983_p10 }
  0x48   :  { %331 = vmatpush2.bf16.msra.mxu1 %v910_v25 }
  0x49   :  { %332 = vmatprep.subr.bf16.mxu1 %v911_v26 }
  0x4c   :  { %333 = vmatpush2.bf16.msra.mxu1 %v913_v27 }
  0x4d   :  { %853 = vmatprep.subr.bf16.mxu1 %v1015_v61 }
  0xe2   :  { %v131_v47 = vpop.f32.mrf.mxu0 }
  0xe3   :  { %v132_v48 = vadd.f32 %v131_v47, %v76_v45 }
  0xe4   :  { %v133_v49 = vpop.f32.mrf.mxu0 }
  0xe5   :  { %v134_v50 = vadd.f32 %v133_v49, %v80_v46  ;;  %v138_v51 = vmax.f32 %v132_v48, 0.0 }
  0xe6   :  { %v135_v52 = vpop.f32.mrf.mxu0 }
  0xe7   :  { %v139_v53 = vmax.f32 %v134_v50, 0.0  ;;  %v140_v56 = vpack.c.bf16 %v138_v51, %v138_v51 }
  0xe8   :  { %v136_v54 = vpop.f32.mrf.mxu0 }
  0xe9   :  { %v141_v55 = vpack.c.bf16 %v139_v53, %v139_v53 }
  0xeb   :  { %764 = vmatprep.mubr.msk.bf16.mxu1 %vm298_vm1, %v141_v55 }
  0xec   :  { %335 = vmatmul.mubr.bf16.vlgmr.msra.gmra.mxu1 %v140_v56 }
  0xed   :  { %861 = vmatprep.mubr.msk.bf16.mxu1 %vm1016_vm2, %v1015_v61  ;;  %854 = vmatpush3.bf16.msra.mxu1 %v938_v19 }
  0xee   :  { %855 = vmatprep.subr.bf16.mxu1 %v1015_v61 }
  0xf1   :  { %856 = vmatpush3.bf16.msra.mxu1 %v939_v20 }
  0xf2   :  { %857 = vmatprep.subr.bf16.mxu1 %v1015_v61 }
  0xf5   :  { %858 = vmatpush3.bf16.msra.mxu1 %v940_v30 }
  0xf6   :  { %859 = vmatprep.subr.bf16.mxu1 %v1015_v61 }
  0xf9   :  { %860 = vmatpush3.bf16.msra.mxu1 %v941_v31 }
 0x1ac   :  { %v336_v1 = vpop.f32.mrf.mxu1 }
 0x1ad   :  { %v337_v2 = vadd.f32 %v336_v1, %v171_v63 }
 0x1ae   :  { %v338_v3 = vpop.f32.mrf.mxu1 }
 0x1af   :  { %v339_v4 = vadd.f32 %v338_v3, %v175_v0  ;;  %v343_v5 = vmax.f32 %v337_v2, 0.0 }
 0x1b0   :  { %v340_v6 = vpop.f32.mrf.mxu1 }
 0x1b1   :  { %v344_v7 = vmax.f32 %v339_v4, 0.0  ;;  %v345_v11 = vpack.c.bf16 %v343_v5, %v343_v5 }
 0x1b2   :  { %v341_v8 = vpop.f32.mrf.mxu1 }
 0x1b3   :  { %v346_v9 = vpack.c.bf16 %v344_v7, %v344_v7 }
 0x1b5   :  { %514 = vmatprep.mubr.bf16.mxu0 %v346_v9 }
 0x1b6   :  { %515 = vmatmul.mubr.bf16.vlgmr.msra.gmra.mxu0 %v345_v11 }
 0x1b7   :  { %834 = vmatpush3.bf16.msra.mxu0 %v930_v10  ;;  %849 = vmatprep.mubr.msk.bf16.mxu0 %vm1016_vm2, %v1015_v61 }
 0x1b8   :  { %835 = vmatprep.subr.bf16.mxu0 %v1015_v61 }
 0x1bb   :  { %836 = vmatpush3.bf16.msra.mxu0 %v931_v12 }
 0x1bc   :  { %837 = vmatprep.subr.bf16.mxu0 %v1015_v61 }
 0x1bf   :  { %838 = vmatpush3.bf16.msra.mxu0 %v932_v13 }
 0x1c0   :  { %839 = vmatprep.subr.bf16.mxu0 %v1015_v61 }
 0x1c3   :  { %840 = vmatpush3.bf16.msra.mxu0 %v933_v14 }
 0x1c4   :  { %841 = vmatprep.subr.bf16.mxu0 %v1015_v61 }
 0x1c7   :  { %842 = vmatpush3.bf16.msra.mxu0 %v934_v15 }
 0x1c8   :  { %843 = vmatprep.subr.bf16.mxu0 %v1015_v61 }
 0x1cb   :  { %844 = vmatpush3.bf16.msra.mxu0 %v935_v16 }
 0x1cc   :  { %845 = vmatprep.subr.bf16.mxu0 %v1015_v61 }
 0x1cf   :  { %846 = vmatpush3.bf16.msra.mxu0 %v936_v17 }
 0x1d0   :  { %847 = vmatprep.subr.bf16.mxu0 %v1015_v61 }
 0x1d3   :  { %848 = vmatpush3.bf16.msra.mxu0 %v937_v18 }
 0x276   :  { %v813_v21 = vpop.f32.mrf.mxu0 }
 0x278   :  { %v814_v23 = vpop.f32.mrf.mxu0 }
 0x279   :  { %v815_v24 = vadd.f32 %v814_v23, %v813_v21 }
 0x27a   :  { %v816_v25 = vpop.f32.mrf.mxu0 }
 0x27b   :  { %v517_v26 = vadd.f32 %v815_v24, %v765_v22 }
 0x27c   :  { %v817_v27 = vpop.f32.mrf.mxu0 }
 0x27d   :  { %v522_v28 = vmax.f32 %v517_v26, 0.0 }
 0x27f   :  { %v523_v29 = vpack.c.bf16 %v522_v28, %v522_v28 }
 0x281   :  { %850 = vmatmul.mubr.bf16.vlgmr.msra.gmra.mxu0 %v523_v29 }
 0x341   :  { %v629_v33 = vpop.f32.mrf.mxu0 }
 0x342   :  { %v630_v34 = vadd.f32 %v782_v32, %v629_v33 }
 0x343   :  { %v851_v35 = vpop.f32.mrf.mxu0 }
 0x344   :  { %v635_v36 = vmax.f32 %v630_v34, 0.0 }
 0x345   :  { %v632_v37 = vpop.f32.mrf.mxu0 }
 0x346   :  { %v636_v38 = vpack.c.bf16 %v635_v36, %v635_v36 }
 0x347   :  { %v852_v39 = vpop.f32.mrf.mxu0 }
 0x348   :  { %862 = vmatmul.mubr.msk.bf16.vlgmr.msra.gmra.mxu1 %vm298_vm1, %v636_v38 }
 0x408   :  { %v713_v41 = vpop.f32.mrf.mxu1 }
 0x409   :  { %v714_v42 = vadd.f32 %v791_v40, %v713_v41 }
 0x40a   :  { %v863_v43 = vpop.f32.mrf.mxu1 }
 0x40b   :  { %v719_v44 = vpack.c.bf16 %v714_v42, %v714_v42 }
 0x40c   :  { %v716_v45 = vpop.f32.mrf.mxu1 }
 0x40d   :  { %720 = vst [vmem:[#allocation7] sm:$0x1] %v719_v44 }
 0x40e   :  { %v864_v46 = vpop.f32.mrf.mxu1 }
 0x40f   :  { %993 = shalt.err (!%p990_p0)
}
 0x410   :  { %730 = dma.vmem_to_hbm [thread:$0]  %s728_s19, 16, %s1160_s11, [#allocation4]  }
 0x411   :  { %1006 = dma.done.wait [#allocation4], 16  }
 0x412   :  { %1007 = vsyncadd [#allocation4], 4294967280 }
 0x413   :  { %734 = vsyncpa [#allocation3], 1 }
 0x414   :  { %735 = vsyncpa [#allocation6], 1 }
 0x415   :  { %736 = vsyncpa [#allocation4], 1 }

</bundles_post_ra>
